<compile_context>
chip_gen: v6e
topology: v6e:2x2x1
jax: 0.10.0
libtpu: 0.0.40
codegen_flags: <defaults>
</compile_context>

<pallas_src>
import math

import jax
import jax.numpy as jnp
from jax import lax
from jax.experimental import pallas as pl
from jax.experimental.pallas import tpu as pltpu


def _round_up(a, b):
    return -(-a // b) * b


# ---------------------------------------------------------------------------
# Kernel 1: per-tile BatchNorm statistics (matmul stays on-chip, no y writeback)
# ---------------------------------------------------------------------------
def _bn_stats_kernel(x_ref, wt_ref, stats_ref):
    y = jnp.dot(x_ref[...], wt_ref[...],
                preferred_element_type=jnp.float32)          # (TILE_N, C_pad)
    s = jnp.sum(y, axis=0, keepdims=True)                    # (1, C_pad)
    ss = jnp.sum(y * y, axis=0, keepdims=True)               # (1, C_pad)
    row = lax.broadcasted_iota(jnp.int32, (2, s.shape[1]), 0)
    st = jnp.where(row == 0, s, ss)                          # (2, C_pad)
    stats_ref[...] = st[None]                                # (1, 2, C_pad)


# ---------------------------------------------------------------------------
# Kernel 2: fused Linear matmul + BatchNorm affine (precomputed) + ReLU
# ---------------------------------------------------------------------------
def _matmul_affine_relu_kernel(x_ref, wt_ref, scale_ref, shift_ref, o_ref):
    y = jnp.dot(x_ref[...], wt_ref[...],
                preferred_element_type=jnp.float32)          # (TILE_N, C_pad)
    o_ref[...] = jnp.maximum(y * scale_ref[...] + shift_ref[...], 0.0)


# ---------------------------------------------------------------------------
# Kernel 3: per-batch masked kNN selection + exact scatter-max via MXU gathers
# ---------------------------------------------------------------------------
def _make_knn_gather_max_kernel(k, sel_unroll):
    def kernel(cpos_ref, by_ref, pos_t_ref, bx_ref, feats_ref, o_ref):
        cpos = cpos_ref[...]                  # (TILE_M, 3)   cluster centers
        pos_t = pos_t_ref[...]                # (3, N)        all points (resident)
        feats = feats_ref[...]                # (N, C_pad)    ReLU'd features (resident)
        tm = cpos.shape[0]
        n = pos_t.shape[1]
        c_pad = feats.shape[1]

        # Masked squared distances (TILE_M, N); pure VPU, coords unrolled.
        same = by_ref[...] == bx_ref[...]     # (TILE_M,1)==(1,N) -> (TILE_M,N)
        d = jnp.where(same, 0.0, jnp.inf)
        for j in range(3):
            diff = cpos[:, j:j + 1] - pos_t[j:j + 1, :]
            d = d + diff * diff

        col = lax.broadcasted_iota(jnp.int32, (tm, n), 1)

        # k greedy nearest-neighbor selections.  Each step gathers the selected
        # point's features with one one-hot MXU matmul (exact gather) and
        # max-accumulates -> exact scatter-max over the k neighbors.
        def sel_body(_, carry):
            d, acc = carry
            dmin = jnp.min(d, axis=1, keepdims=True)
            idx = jnp.min(jnp.where(d == dmin, col, n), axis=1, keepdims=True)
            hit = col == idx                                  # one-hot per row
            gathered = jnp.dot(hit.astype(jnp.float32), feats,
                               preferred_element_type=jnp.float32)  # (TILE_M, C_pad)
            acc = jnp.maximum(acc, gathered)
            d = jnp.where(hit, jnp.inf, d)
            return d, acc

        acc0 = jnp.full((tm, c_pad), -jnp.inf, jnp.float32)
        # Partial unroll: keeps LLO scheduling visibility without exploding the
        # (TILE_M, N) live ranges / spilling for large N.
        _, acc = lax.fori_loop(0, k, sel_body, (d, acc0), unroll=sel_unroll)
        o_ref[...] = acc

    return kernel


# ---------------------------------------------------------------------------
# Pallas wrappers
# ---------------------------------------------------------------------------
def mlp_bn_relu(x_pad, wt_pad, gamma_pad, beta_pad, n_real, tile_n):
    """Linear + BatchNorm1d(training-mode batch stats) + ReLU.

    Returns features of shape (N_pad, C_pad).  The Linear bias is omitted on
    purpose: BatchNorm subtracts the batch mean, which cancels any per-channel
    bias exactly.
    """
    np_, c_in = x_pad.shape
    c_pad = wt_pad.shape[1]
    num_tiles = np_ // tile_n

    # Pass 1: per-tile channel sum / sumsq partials only (tiny output).
    stats = pl.pallas_call(
        _bn_stats_kernel,
        grid=(num_tiles,),
        out_shape=jax.ShapeDtypeStruct((num_tiles, 2, c_pad), jnp.float32),
        in_specs=[pl.BlockSpec((tile_n, c_in), lambda i: (i, 0)),
                  pl.BlockSpec((c_in, c_pad), lambda i: (0, 0))],    # resident
        out_specs=pl.BlockSpec((1, 2, c_pad), lambda i: (i, 0, 0)),
        compiler_params=pltpu.CompilerParams(
            dimension_semantics=("parallel",)),
    )(x_pad, wt_pad)

    # Reduce the partial statistics (biased batch stats, BatchNorm1d training
    # mode) and fold mean/var/gamma/beta into a single scale/shift.
    ch_sum = jnp.sum(stats[:, 0, :], axis=0)
    ch_ssq = jnp.sum(stats[:, 1, :], axis=0)
    mean = ch_sum / n_real
    var = jnp.maximum(ch_ssq / n_real - mean * mean, 0.0)
    inv = lax.rsqrt(var + 1e-5)
    scale = (gamma_pad * inv).reshape(1, c_pad)
    shift = (beta_pad - mean * gamma_pad * inv).reshape(1, c_pad)

    # Pass 2: fused matmul (recomputed, K=C_in so it is free) + affine + ReLU.
    feats = pl.pallas_call(
        _matmul_affine_relu_kernel,
        grid=(num_tiles,),
        out_shape=jax.ShapeDtypeStruct((np_, c_pad), jnp.float32),
        in_specs=[pl.BlockSpec((tile_n, c_in), lambda i: (i, 0)),
                  pl.BlockSpec((c_in, c_pad), lambda i: (0, 0)),     # resident
                  pl.BlockSpec((1, c_pad), lambda i: (0, 0)),        # resident
                  pl.BlockSpec((1, c_pad), lambda i: (0, 0))],       # resident
        out_specs=pl.BlockSpec((tile_n, c_pad), lambda i: (i, 0)),
        compiler_params=pltpu.CompilerParams(
            dimension_semantics=("parallel",)),
    )(x_pad, wt_pad, scale, shift)
    return feats


def _knn_vmem_limit_bytes(np_, c_pad, tile_m):
    """Derive the scoped-VMEM budget for the kNN kernel from actual demand,
    clamped to 90% of the local chip's VMEM (v5e/v6e 128 MiB, v7x 64 MiB)."""
    f32 = 4
    resident = f32 * np_ * (c_pad + 3 + 1)           # feats + pos_t + bx
    tiles = f32 * tile_m * (3 + 1 + c_pad)           # cpos + by + out tile
    temps = f32 * tile_m * np_ * 4 + f32 * tile_m * c_pad * 2
    needed = 2 * (resident + tiles) + temps + (2 << 20)
    try:
        cap = pltpu.get_tpu_info().vmem_capacity_bytes
    except Exception:
        cap = 64 * 1024 * 1024                       # v7x per-TC (smallest)
    return int(min(max(needed, 16 * 1024 * 1024), int(cap * 0.9)))


def knn_scatter_max(cpos_pad, by, pos_t, bx, feats, k, tile_m, sel_unroll=2):
    mp = cpos_pad.shape[0]
    np_, c_pad = feats.shape
    # TODO(synk): for very large point counts (N_pad * C_pad * 4B approaching
    # the VMEM budget) the resident feats/pos slabs should be streamed with an
    # inner N-chunk pipeline (pltpu.emit_pipeline) and/or stored as bf16; full
    # residency is correct and fastest at the sizes used here.
    return pl.pallas_call(
        _make_knn_gather_max_kernel(k, sel_unroll),
        grid=(mp // tile_m,),
        out_shape=jax.ShapeDtypeStruct((mp, c_pad), jnp.float32),
        in_specs=[pl.BlockSpec((tile_m, 3), lambda i: (i, 0)),
                  pl.BlockSpec((tile_m, 1), lambda i: (i, 0)),
                  pl.BlockSpec((3, np_), lambda i: (0, 0)),       # resident
                  pl.BlockSpec((1, np_), lambda i: (0, 0)),       # resident
                  pl.BlockSpec((np_, c_pad), lambda i: (0, 0))],  # resident
        out_specs=pl.BlockSpec((tile_m, c_pad), lambda i: (i, 0)),
        compiler_params=pltpu.CompilerParams(
            dimension_semantics=("parallel",),
            vmem_limit_bytes=_knn_vmem_limit_bytes(np_, c_pad, tile_m)),
    )(cpos_pad, by, pos_t, bx, feats)


# ---------------------------------------------------------------------------
# FPS glue (sequential greedy selection, plain JAX)
# ---------------------------------------------------------------------------
def _fps_segment(pos_seg, num_samples):
    # TODO(synk): torch_geometric fps uses a random start point by default;
    # here we start deterministically from the segment's first point.
    def dist2(p, q):
        return jnp.sum((p - q) ** 2, axis=-1)

    sel0 = jnp.zeros((num_samples,), jnp.int32)
    min_d0 = dist2(pos_seg, pos_seg[0])

    def body(i, carry):
        sel, min_d = carry
        nxt = jnp.argmax(min_d).astype(jnp.int32)
        sel = sel.at[i].set(nxt)
        min_d = jnp.minimum(min_d, dist2(pos_seg, pos_seg[nxt]))
        return sel, min_d

    sel, _ = lax.fori_loop(1, num_samples, body, (sel0, min_d0))
    return sel


def fps_indices(pos, segment_sizes, ratio):
    sizes = tuple(int(s) for s in segment_sizes)
    nums = tuple(max(1, math.ceil(ratio * s)) for s in sizes)
    offsets = []
    off = 0
    for s in sizes:
        offsets.append(off)
        off += s
    if len(set(sizes)) == 1 and len(set(nums)) == 1:
        # Batched path: one vmapped greedy loop instead of B sequential loops.
        size, num = sizes[0], nums[0]
        pos_b = pos[:len(sizes) * size].reshape(len(sizes), size, 3)
        sel = jax.vmap(lambda p: _fps_segment(p, num))(pos_b)
        sel = sel + jnp.asarray(offsets, jnp.int32)[:, None]
        return sel.reshape(-1)
    idx_list = [_fps_segment(pos[o:o + s], num) + o
                for o, s, num in zip(offsets, sizes, nums)]
    return jnp.concatenate(idx_list, axis=0)


# ---------------------------------------------------------------------------
# TransitionDown forward
# ---------------------------------------------------------------------------
def transition_down(x, pos, batch_vec, segment_sizes, w, b, gamma, beta,
                    ratio=0.1, k=16, tile_m=64, tile_n=1024):
    n, c_in = x.shape
    c_out = w.shape[0]
    c_pad = _round_up(c_out, 128)            # lane-dense channel dim
    del b  # Linear bias is cancelled exactly by BatchNorm's mean subtraction.

    # --- farthest point sampling (plain JAX glue) ---
    id_clusters = fps_indices(pos, segment_sizes, ratio)
    sub_batch = batch_vec[id_clusters]
    sub_pos = pos[id_clusters]
    m = id_clusters.shape[0]

    # --- tiling / padding parameters ---
    tile_n = min(tile_n, _round_up(n, 8))
    np_ = _round_up(n, tile_n)
    tile_m = _round_up(tile_m, 8)
    mp = _round_up(m, tile_m)

    f32 = jnp.float32
    # Channel-padded parameters (padded channels stay exactly 0 through BN+ReLU).
    wt_pad = jnp.zeros((c_in, c_pad), f32).at[:, :c_out].set(w.astype(f32).T)
    gamma_pad = jnp.zeros((c_pad,), f32).at[:c_out].set(gamma.astype(f32))
    beta_pad = jnp.zeros((c_pad,), f32).at[:c_out].set(beta.astype(f32))

    # Point-padded inputs.  Padded points get batch id -2 and padded centers -1
    # so they never match a real batch.
    x_pad = jnp.zeros((np_, c_in), f32).at[:n].set(x.astype(f32))
    pos_t = jnp.zeros((3, np_), f32).at[:, :n].set(pos.astype(f32).T)
    bx = jnp.full((1, np_), -2, jnp.int32).at[:, :n].set(
        batch_vec.astype(jnp.int32)[None, :])
    cpos_pad = jnp.zeros((mp, 3), f32).at[:m].set(sub_pos.astype(f32))
    by = jnp.full((mp, 1), -1, jnp.int32).at[:m, 0].set(
        sub_batch.astype(jnp.int32))

    feats = mlp_bn_relu(x_pad, wt_pad, gamma_pad, beta_pad, n, tile_n)
    out_pad = knn_scatter_max(cpos_pad, by, pos_t, bx, feats, k, tile_m)
    out = out_pad[:m, :c_out]
    return out, sub_pos, sub_batch


# ---------------------------------------------------------------------------
# Pure-JAX reference (for correctness check only)
# ---------------------------------------------------------------------------
def reference_forward(x, pos, batch_vec, segment_sizes, w, b, gamma, beta,
                      ratio, k):
    id_clusters = fps_indices(pos, segment_sizes, ratio)
    sub_batch = batch_vec[id_clusters]
    sub_pos = pos[id_clusters]
    y = x @ w.T + b
    mean = y.mean(0, keepdims=True)
    var = ((y - mean) ** 2).mean(0, keepdims=True)
    y = (y - mean) / jnp.sqrt(var + 1e-5) * gamma + beta
    y = jnp.maximum(y, 0.0)
    d = jnp.sum((sub_pos[:, None, :] - pos[None, :, :]) ** 2, axis=-1)
    d = jnp.where(sub_batch[:, None] == batch_vec[None, :], d, jnp.inf)
    _, nbr = lax.top_k(-d, k)                                 # (M, k)
    out = jnp.max(y[nbr], axis=1)
    return out, sub_pos, sub_batch


if __name__ == "__main__":
    B = 2
    N_PER = 64
    N = B * N_PER
    IN_CH, OUT_CH = 8, 32
    RATIO, K = 0.25, 16

    key = jax.random.PRNGKey(0)
    kx, kp, kw, kb, kg, kbe = jax.random.split(key, 6)
    x = jax.random.normal(kx, (N, IN_CH), jnp.float32)
    pos = jax.random.normal(kp, (N, 3), jnp.float32)
    batch_vec = jnp.repeat(jnp.arange(B, dtype=jnp.int32), N_PER)
    segment_sizes = (N_PER,) * B

    # Deterministic synthetic parameters (Linear + BatchNorm1d affine).
    w = 0.1 * jax.random.normal(kw, (OUT_CH, IN_CH), jnp.float32)
    b = 0.1 * jax.random.normal(kb, (OUT_CH,), jnp.float32)
    gamma = 1.0 + 0.1 * jax.random.normal(kg, (OUT_CH,), jnp.float32)
    beta = 0.1 * jax.random.normal(kbe, (OUT_CH,), jnp.float32)

    out, sub_pos, sub_batch = transition_down(
        x, pos, batch_vec, segment_sizes, w, b, gamma, beta, ratio=RATIO, k=K)
    jax.block_until_ready(out)

    ref_out, ref_pos, ref_batch = reference_forward(
        x, pos, batch_vec, segment_sizes, w, b, gamma, beta, RATIO, K)

    assert out.shape == ref_out.shape
    assert jnp.allclose(out, ref_out, atol=1e-4, rtol=1e-4), "feature mismatch"
    assert jnp.allclose(sub_pos, ref_pos), "pos mismatch"
    assert jnp.array_equal(sub_batch, ref_batch), "batch mismatch"
    print("KERNEL_OK")
</pallas_src>

<mosaic_0001>
module attributes {stable_mosaic.version = 11 : i64} {
  func.func @_bn_stats_kernel(%arg0: i32, %arg1: memref<128x8xf32, #tpu.memory_space<vmem>>, %arg2: memref<8x128xf32, #tpu.memory_space<vmem>>, %arg3: memref<1x2x128xf32, #tpu.memory_space<vmem>>) attributes {dimension_semantics = [#tpu.dimension_semantics<parallel>], iteration_bounds = array<i64: 1>, scalar_prefetch = 0 : i64, scratch_operands = 0 : i64, tpu.core_type = #tpu.core_type<tc>, window_params = [{transform_indices = @transform_0, window_bounds = array<i64: 128, 8>}, {pipeline_mode = #tpu.pipeline_mode<synchronous>, transform_indices = @transform_1, window_bounds = array<i64: 8, 128>}, {transform_indices = @transform_2, window_bounds = array<i64: 1, 2, 128>}]} {
    %c0 = arith.constant 0 : index
    %c0_0 = arith.constant 0 : index
    %0 = vector.load %arg1[%c0, %c0_0] : memref<128x8xf32, #tpu.memory_space<vmem>>, vector<128x8xf32>
    %c0_1 = arith.constant 0 : index
    %c0_2 = arith.constant 0 : index
    %1 = vector.load %arg2[%c0_1, %c0_2] : memref<8x128xf32, #tpu.memory_space<vmem>>, vector<8x128xf32>
    %cst = arith.constant dense<0.000000e+00> : vector<128x128xf32>
    %2 = tpu.matmul %0, %1, %cst {dimension_numbers = #tpu.dot_dimension_numbers<[1], [0], [0], [1], [0, 0, 1, 1], [], []>} : vector<128x8xf32>, vector<8x128xf32>, vector<128x128xf32> -> vector<128x128xf32>
    %cst_3 = arith.constant dense<0.000000e+00> : vector<128xf32>
    %3 = vector.multi_reduction <add>, %2, %cst_3 [0] : vector<128x128xf32> to vector<128xf32>
    %4 = vector.shape_cast %3 : vector<128xf32> to vector<1x128xf32>
    %5 = arith.mulf %2, %2 : vector<128x128xf32>
    %cst_4 = arith.constant dense<0.000000e+00> : vector<128xf32>
    %6 = vector.multi_reduction <add>, %5, %cst_4 [0] : vector<128x128xf32> to vector<128xf32>
    %7 = vector.shape_cast %6 : vector<128xf32> to vector<1x128xf32>
    %8 = tpu.iota {dimensions = array<i32: 0>} : vector<2x128xi32>
    %c0_i32 = arith.constant 0 : i32
    %9 = vector.broadcast %c0_i32 : i32 to vector<2x128xi32>
    %10 = arith.cmpi eq, %8, %9 : vector<2x128xi32>
    %11 = vector.shape_cast %4 : vector<1x128xf32> to vector<1x128xf32>
    %12 = vector.broadcast %11 : vector<1x128xf32> to vector<2x128xf32>
    %13 = vector.shape_cast %7 : vector<1x128xf32> to vector<1x128xf32>
    %14 = vector.broadcast %13 : vector<1x128xf32> to vector<2x128xf32>
    %15 = arith.select %10, %12, %14 : vector<2x128xi1>, vector<2x128xf32>
    %16 = vector.shape_cast %15 : vector<2x128xf32> to vector<1x2x128xf32>
    %c0_5 = arith.constant 0 : index
    %c0_6 = arith.constant 0 : index
    %c0_7 = arith.constant 0 : index
    %17 = vector.load %arg3[%c0_5, %c0_6, %c0_7] : memref<1x2x128xf32, #tpu.memory_space<vmem>>, vector<1x2x128xf32>
    tpu.vector_store %arg3[%c0_5, %c0_6, %c0_7], %16 {strides = array<i32>} : memref<1x2x128xf32, #tpu.memory_space<vmem>>, vector<1x2x128xf32>,
    return
  }
  func.func @transform_0(%arg0: i32) -> (i32, i32) {
    %c0_i32 = arith.constant 0 : i32
    %c0_i32_0 = arith.constant 0 : i32
    return %arg0, %c0_i32 : i32, i32
  }
  func.func @transform_1(%arg0: i32) -> (i32, i32) {
    %c0_i32 = arith.constant 0 : i32
    %c0_i32_0 = arith.constant 0 : i32
    %c0_i32_1 = arith.constant 0 : i32
    return %c0_i32, %c0_i32_0 : i32, i32
  }
  func.func @transform_2(%arg0: i32) -> (i32, i32, i32) {
    %c0_i32 = arith.constant 0 : i32
    %c0_i32_0 = arith.constant 0 : i32
    %c0_i32_1 = arith.constant 0 : i32
    return %arg0, %c0_i32, %c0_i32_0 : i32, i32, i32
  }
}

</mosaic_0001>

<bundles_post_ra>
// kernel: tpu_custom_call.1
= control target key start
LH: loop header
LB: loop body
LE: loop exit
PB: predicated region body
PF: predicated region fallthrough
CT: control target
= control target key end

     0   :  { %vm29_vm0 = vcmask 64512   ;;  %s470_s0 = inlined_call_operand.vmem [shape: f32[128,8], index: 0, kind: input, shape index: {}]   ;;  %s471_s1 = inlined_call_operand.vmem [shape: f32[8,128], index: 1, kind: input, shape index: {}]   ;;  %s472_s2 = inlined_call_operand.hbm [shape: f32[1,2,128], index: 2, kind: output, shape index: {}]  }
   0x1   :  { %v28_v0 = vld [vmem:[%s471_s1] sm:$0xff]  ;;  %v13_v2 = vld [vmem:[%s470_s0 + $0x8] sm:$0xff]  ;;  %v14_v3 = vld [vmem:[%s470_s0 + $0x10] sm:$0xff] }
   0x2   :  { %v12_v1 = vld [vmem:[%s470_s0] sm:$0xff]  ;;  %333 = vmatprep.subr.mxu0 %v28_v0  ;;  %359 = vmatprep.subr.mxu1 %v28_v0  ;;  %v21_v5 = vld [vmem:[%s470_s0 + $0x48] sm:$0xff]  ;;  %v22_v6 = vld [vmem:[%s470_s0 + $0x50] sm:$0xff] }
   0x3   :  { %335 = vmatprep.mubr.msk.f32.mxu0 %vm29_vm0, %v12_v1  ;;  %334 = vmatpush3.msra.mxu0 %v28_v0  ;;  %v20_v4 = vld [vmem:[%s470_s0 + $0x40] sm:$0xff]  ;;  %v15_v7 = vld [vmem:[%s470_s0 + $0x18] sm:$0xff] }
   0x4   :  { %336 = vmatmul.mubr.msk.f32.vlgmr.msra.gmra.mxu0 %vm29_vm0, %v13_v2  ;;  %360 = vmatpush3.msra.mxu1 %v28_v0  ;;  %v16_v8 = vld [vmem:[%s470_s0 + $0x20] sm:$0xff] }
   0x5   :  { %338 = vmatprep.mubr.msk.f32.mxu0 %vm29_vm0, %v14_v3  ;;  %347 = vmatprep.mubr.msk.f32.mxu1 %vm29_vm0, %v20_v4 }
   0x6   :  { %348 = vmatmul.mubr.msk.f32.vlgmr.msra.gmra.mxu1 %vm29_vm0, %v21_v5 }
   0x7   :  { %7 = vsyncpa [#allocation3], 0  ;;  %350 = vmatprep.mubr.msk.f32.mxu1 %vm29_vm0, %v22_v6  ;;  %v23_v9 = vld [vmem:[%s470_s0 + $0x58] sm:$0xff]  ;;  %v24_v10 = vld [vmem:[%s470_s0 + $0x60] sm:$0xff] }
   0x8   :  { %339 = vmatmul.mubr.msk.f32.gmra.mxu0 %vm29_vm0, %v15_v7  ;;  %v17_v11 = vld [vmem:[%s470_s0 + $0x28] sm:$0xff]  ;;  %v18_v12 = vld [vmem:[%s470_s0 + $0x30] sm:$0xff]  ;;  %v19_v15 = vld [vmem:[%s470_s0 + $0x38] sm:$0xff] }
   0x9   :  { %341 = vmatprep.mubr.msk.f32.mxu0 %vm29_vm0, %v16_v8  ;;  %v25_v13 = vld [vmem:[%s470_s0 + $0x68] sm:$0xff]  ;;  %v26_v14 = vld [vmem:[%s470_s0 + $0x70] sm:$0xff]  ;;  %v27_v16 = vld [vmem:[%s470_s0 + $0x78] sm:$0xff]  ;;  %s384_s0 = smov [#allocation2]  }
   0xa   :  { %351 = vmatmul.mubr.msk.f32.gmra.mxu1 %vm29_vm0, %v23_v9  ;;  %s292_s14 = sshll.u32 %s384_s0, 4  ;;  %s293_s14 = int_to_ptr.vmem [resolvable:$true] %s292_s14 }
   0xb   :  { %353 = vmatprep.mubr.msk.f32.mxu1 %vm29_vm0, %v24_v10  ;;  %s362_s15 = scalar_lea.vmem %s293_s14, 32  ;;  %p367_p1 = scmp.lt.s32.totalorder %s293_s14, %s293_s14 }
   0xc   :  { %342 = vmatmul.mubr.msk.f32.gmra.mxu0 %vm29_vm0, %v17_v11  ;;  %p363_p0 = scmp.ne.s32.totalorder %s293_s14, %s362_s15  ;;  %p368_p2 = scmp.lt.s32.totalorder %s362_s15, %s362_s15 }
   0xd   :  { %344 = vmatprep.mubr.msk.f32.mxu0 %vm29_vm0, %v18_v12 }
   0xe   :  { %354 = vmatmul.mubr.msk.f32.gmra.mxu1 %vm29_vm0, %v25_v13  ;;  %p369_p3 = por %p368_p2, %p367_p1 }
   0xf   :  { %356 = vmatprep.mubr.msk.f32.mxu1 %vm29_vm0, %v26_v14 }
  0x10   :  { %345 = vmatmul.mubr.msk.f32.gmra.mxu0 %vm29_vm0, %v19_v15  ;;  %p370_p4 = pnand %p369_p3, %p363_p0 }
  0x12   :  { %357 = vmatmul.mubr.msk.f32.gmra.mxu1 %vm29_vm0, %v27_v16 }
  0xc4   :  { %v337_v17 = vpop.f32.mrf.mxu0 }
  0xc5   :  { %v245_v23 = vmul.f32 %v337_v17, %v337_v17 }
  0xc6   :  { %v144_v18 = vpop.f32.mrf.mxu0  ;;  %v349_v19 = vpop.f32.mrf.mxu1 }
  0xc7   :  { %v244_v20 = vmul.f32 %v144_v18, %v144_v18  ;;  %v223_v24 = vadd.f32 %v337_v17, %v144_v18  ;;  %v253_v55 = vmul.f32 %v349_v19, %v349_v19  ;;  %v281_v18 = vlaneseq }
  0xc8   :  { %v340_v21 = vpop.f32.mrf.mxu0  ;;  %v184_v22 = vpop.f32.mrf.mxu1 }
  0xc9   :  { %v260_v26 = vadd.f32 %v245_v23, %v244_v20  ;;  %v247_v31 = vmul.f32 %v340_v21, %v340_v21  ;;  %v252_v53 = vmul.f32 %v184_v22, %v184_v22  ;;  %v282_v23 = vshrl.u32 %v281_v18, 7 }
  0xca   :  { %v154_v25 = vpop.f32.mrf.mxu0  ;;  %v352_v30 = vpop.f32.mrf.mxu1 }
  0xcb   :  { %v224_v27 = vadd.f32 %v223_v24, %v154_v25  ;;  %v246_v28 = vmul.f32 %v154_v25, %v154_v25  ;;  %v255_v62 = vmul.f32 %v352_v30, %v352_v30  ;;  %vm283_vm1 = vcmp.eq.s32.totalorder %v282_v23, 0 }
  0xcc   :  { %v343_v29 = vpop.f32.mrf.mxu0  ;;  %v194_v39 = vpop.f32.mrf.mxu1 }
  0xcd   :  { %v261_v32 = vadd.f32 %v260_v26, %v246_v28  ;;  %v225_v33 = vadd.f32 %v340_v21, %v224_v27  ;;  %v249_v40 = vmul.f32 %v343_v29, %v343_v29  ;;  %v254_v59 = vmul.f32 %v194_v39, %v194_v39 }
  0xce   :  { %v164_v34 = vpop.f32.mrf.mxu0  ;;  %v355_v47 = vpop.f32.mrf.mxu1 }
  0xcf   :  { %v226_v35 = vadd.f32 %v225_v33, %v164_v34  ;;  %v248_v36 = vmul.f32 %v164_v34, %v164_v34  ;;  %v262_v37 = vadd.f32 %v261_v32, %v247_v31  ;;  %v257_v5 = vmul.f32 %v355_v47, %v355_v47 }
  0xd0   :  { %v346_v38 = vpop.f32.mrf.mxu0  ;;  %v204_v54 = vpop.f32.mrf.mxu1 }
  0xd1   :  { %v263_v41 = vadd.f32 %v262_v37, %v248_v36  ;;  %v227_v42 = vadd.f32 %v343_v29, %v226_v35  ;;  %v251_v48 = vmul.f32 %v346_v38, %v346_v38  ;;  %v256_v2 = vmul.f32 %v204_v54, %v204_v54 }
  0xd2   :  { %v174_v43 = vpop.f32.mrf.mxu0  ;;  %v358_v61 = vpop.f32.mrf.mxu1 }
  0xd3   :  { %v228_v44 = vadd.f32 %v227_v42, %v174_v43  ;;  %v250_v45 = vmul.f32 %v174_v43, %v174_v43  ;;  %v264_v46 = vadd.f32 %v263_v41, %v249_v40  ;;  %v259_v11 = vmul.f32 %v358_v61, %v358_v61 }
  0xd4   :  { %v214_v4 = vpop.f32.mrf.mxu1 }
  0xd5   :  { %v229_v49 = vadd.f32 %v346_v38, %v228_v44  ;;  %v265_v50 = vadd.f32 %v264_v46, %v250_v45  ;;  %v258_v9 = vmul.f32 %v214_v4, %v214_v4 }
  0xd7   :  { %v266_v51 = vadd.f32 %v265_v50, %v251_v48  ;;  %v230_v52 = vadd.f32 %v229_v49, %v184_v22 }
  0xd9   :  { %v267_v56 = vadd.f32 %v266_v51, %v252_v53  ;;  %v231_v57 = vadd.f32 %v349_v19, %v230_v52 }
  0xdb   :  { %v232_v58 = vadd.f32 %v231_v57, %v194_v39  ;;  %v268_v60 = vadd.f32 %v267_v56, %v253_v55 }
  0xdd   :  { %v269_v63 = vadd.f32 %v268_v60, %v254_v59  ;;  %v233_v0 = vadd.f32 %v352_v30, %v232_v58 }
  0xdf   :  { %v234_v1 = vadd.f32 %v233_v0, %v204_v54  ;;  %v270_v3 = vadd.f32 %v269_v63, %v255_v62 }
  0xe1   :  { %v271_v6 = vadd.f32 %v270_v3, %v256_v2  ;;  %v235_v7 = vadd.f32 %v355_v47, %v234_v1 }
  0xe3   :  { %v236_v8 = vadd.f32 %v235_v7, %v214_v4  ;;  %v272_v10 = vadd.f32 %v271_v6, %v257_v5 }
  0xe5   :  { %v237_v12 = vadd.f32 %v358_v61, %v236_v8  ;;  %v273_v13 = vadd.f32 %v272_v10, %v258_v9 }
  0xe7   :  { %v238_v14 = vrot.slane %v237_v12, 4  ;;  %v274_v15 = vadd.f32 %v273_v13, %v259_v11 }
  0xe9   :  { %v239_v16 = vadd.f32 %v238_v14, %v237_v12  ;;  %v275_v17 = vrot.slane %v274_v15, 4 }
  0xeb   :  { %v240_v19 = vrot.slane %v239_v16, 2  ;;  %v276_v20 = vadd.f32 %v275_v17, %v274_v15 }
  0xed   :  { %v241_v21 = vadd.f32 %v240_v19, %v239_v16  ;;  %v277_v22 = vrot.slane %v276_v20, 2 }
  0xef   :  { %v242_v24 = vrot.slane %v241_v21, 1  ;;  %v278_v25 = vadd.f32 %v277_v22, %v276_v20 }
  0xf1   :  { %v279_v26 = vrot.slane %v278_v25, 1  ;;  %v243_v27 = vadd.f32 %v242_v24, %v241_v21 }
  0xf3   :  { %v280_v28 = vadd.f32 %v279_v26, %v278_v25 }
  0xf5   :  { %v284_v29 = vsel %vm283_vm1, %v243_v27, %v280_v28 }
  0xf6   :  { %285 = vst [vmem:[#allocation2] sm:$0x3] %v284_v29 }
  0xf7   :  { %373 = shalt.err (!%p370_p4)
}
  0xf8   :  { %295 = dma.vmem_to_hbm [thread:$0]  %s293_s14, 32, %s472_s2, [#allocation3]  }
  0xf9   :  { %382 = dma.done.wait [#allocation3], 32  }
  0xfa   :  { %383 = vsyncadd [#allocation3], 4294967264 }
  0xfb   :  { %299 = vsyncpa [#allocation3], 1 }

</bundles_post_ra>
